<compile_context>
chip_gen: v7x
topology: tpu7x:2x2x1
jax: 0.10.0
libtpu: 0.0.40
codegen_flags: <defaults>
</compile_context>

<pallas_src>
import jax
import jax.numpy as jnp
from jax import lax
from jax.experimental import pallas as pl
from jax.experimental.pallas import tpu as pltpu

# Small shapes consistent with the module's forward
# (original: EMBEDDING_DIM=768, NUM_FILTERS=100, SEQ=input_len, num_classes=3)
B = 2                      # batch
SEQ = 16                   # input_len (token sequence length)
EMB = 32                   # EMBEDDING_DIM
NF = 16                    # NUM_FILTERS
WIN_SIZES = (3, 4, 5)
NUM_CLASSES = 3
NWIN = len(WIN_SIZES)
FEAT = NF * NWIN                               # 48 (PyTorch feature width)

NF_PAD = ((NF + 127) // 128) * 128             # 128: each filter block padded to full lanes
CAT_PAD = sum(WIN_SIZES) * NF_PAD              # 12 * 128 = 1536 fused-matmul lane width
OUT_W = NWIN * NF_PAD + 128                    # 512: [feat_pad | probs | zero pad] slab


def _bert_cnn_kernel(layers_ref, wcat_ref, bconv_ref, wfc_ref, bfc_ref, out_ref):
    b_blk, _, seq, emb = layers_ref.shape
    m = b_blk * seq                            # matmul M rows = batch-block * seq

    # Sum of the last 4 BERT layers per token (f32 VPU work on all generations).
    x = jnp.sum(layers_ref[...].astype(jnp.float32), axis=1)       # (b_blk, seq, emb)
    xf = x.reshape(m, emb).astype(wcat_ref.dtype)                  # bf16 cast only for MXU

    # ONE fused MXU matmul for every (window, kernel-position) pair.  Each 128-aligned
    # NF_PAD-wide lane block of `y` holds one position's contribution; f32 accumulation.
    y = jnp.dot(xf, wcat_ref[...], preferred_element_type=jnp.float32)   # (m, CAT_PAD)

    bconv = bconv_ref[...]                                         # (NWIN, NF_PAD), f32
    # Row index inside each sequence (masks invalid conv positions and rolled wrap rows).
    row_in_seq = lax.rem(lax.broadcasted_iota(jnp.int32, (m, 1), 0), seq)

    pooled = []
    base = 0
    for wi, w in enumerate(WIN_SIZES):
        l_out = seq - w + 1
        # conv1d(kernel=w, stride=1) == sum of w sublane-rotated, 128-lane-aligned blocks.
        acc = y[:, base * NF_PAD:(base + 1) * NF_PAD]
        for j in range(1, w):
            blk = y[:, (base + j) * NF_PAD:(base + j + 1) * NF_PAD]
            # Bring row (r + j) to row r via XLU rotation (free slot while VPU adds).
            # Rows that wrap (incl. across batch boundaries) are invalid -> masked below.
            acc = acc + pltpu.roll(blk, m - j, 0)
        acc = jnp.maximum(acc + bconv[wi][None, :], 0.0)           # exact bias add + ReLU
        acc = jnp.where(row_in_seq < l_out, acc, 0.0)              # zero invalid positions
        # MaxPool1d(kernel=l_out): ReLU >= 0, so masked-to-0 rows never win the max.
        pooled.append(jnp.max(acc.reshape(b_blk, seq, NF_PAD), axis=1))   # (b_blk, NF_PAD)
        base += w

    # Window-major, NF_PAD-padded feature slab; fc weight rows were permuted/zero-padded at
    # trace time to match, so no in-kernel interleave or narrow slicing is needed.
    feat_pad = jnp.concatenate(pooled, axis=-1)                    # (b_blk, NWIN*NF_PAD)
    logits = jnp.dot(feat_pad, wfc_ref[...],
                     preferred_element_type=jnp.float32) + bfc_ref[...]
    mmax = jnp.max(logits, axis=-1, keepdims=True)
    e = jnp.exp(logits - mmax)
    probs = e * pl.reciprocal(jnp.sum(e, axis=-1, keepdims=True), approx=True)

    # Single lane-dense (b_blk, OUT_W) store: [feat_pad | probs | zero pad].
    pad = jnp.zeros((b_blk, OUT_W - NWIN * NF_PAD - NUM_CLASSES), jnp.float32)
    out_ref[...] = jnp.concatenate([feat_pad, probs, pad], axis=-1)


def bert_cnn_forward(layers, w3, b3, w4, b4, w5, b5, wfc, bfc,
                     matmul_dtype=jnp.float32, b_blk=None, vmem_limit_bytes=None):
    """CNN-head forward.  All weight prep (padding / concat / row permutation) is trace-time.

    matmul_dtype: jnp.bfloat16 on v6e/v7x at real shapes halves the dominant layers DMA and
      doubles MXU rate (f32 accumulation kept).  b_blk: batch-block size per grid step — at
      real shapes pick it so M = b_blk*SEQ >= 128 (v5e) / 256 (v6e/v7x) and the double-
      buffered layers block + weights fit the per-generation scoped VMEM (set
      vmem_limit_bytes with headroom: ~16/32/32 MiB default on v5e/v6e/v7x).
    """
    bt = layers.shape[0]
    if b_blk is None:
        b_blk = bt
    assert bt % b_blk == 0, "batch must be divisible by the batch block"
    grid = (bt // b_blk,)

    # ---- trace-time weight prep (layout plumbing, done once) ----
    # Fused conv weight: one NF_PAD-wide (128-aligned) column block per (window, position);
    # padded columns are zero so they contribute nothing.
    blocks = []
    for wk in (w3, w4, w5):
        for j in range(wk.shape[0]):
            blocks.append(jnp.zeros((EMB, NF_PAD), jnp.float32).at[:, :NF].set(wk[j]))
    wcat = jnp.concatenate(blocks, axis=-1).astype(matmul_dtype)        # (EMB, CAT_PAD)

    # Per-window biases, zero-padded to NF_PAD (added once post-sum inside the kernel).
    bconv = jnp.zeros((NWIN, NF_PAD), jnp.float32)
    for wi, bk in enumerate((b3, b4, b5)):
        bconv = bconv.at[wi, :NF].set(bk[0])

    # fc rows permuted + zero-padded so the kernel's window-major padded feat slab multiplies
    # directly: padded-row i = wi*NF_PAD + f  <-  PyTorch filter-major row f*NWIN + wi.
    wfc_pad = jnp.zeros((NWIN * NF_PAD, NUM_CLASSES), jnp.float32)
    for wi in range(NWIN):
        wfc_pad = wfc_pad.at[wi * NF_PAD:wi * NF_PAD + NF].set(wfc[wi::NWIN])

    if matmul_dtype != jnp.float32:
        layers = layers.astype(matmul_dtype)   # halve the dominant HBM stream (v6e/v7x)

    grid_spec = pltpu.PrefetchScalarGridSpec(
        num_scalar_prefetch=0,
        grid=grid,
        in_specs=[
            # layers: tiled per batch block -> pipelined DMA at real shapes.
            pl.BlockSpec((b_blk, 4, SEQ, EMB), lambda i: (i, 0, 0, 0)),
            # weights: constant index_map -> stay resident across grid steps.
            pl.BlockSpec((EMB, CAT_PAD), lambda i: (0, 0)),
            pl.BlockSpec((NWIN, NF_PAD), lambda i: (0, 0)),
            pl.BlockSpec((NWIN * NF_PAD, NUM_CLASSES), lambda i: (0, 0)),
            pl.BlockSpec((1, NUM_CLASSES), lambda i: (0, 0)),
        ],
        out_specs=pl.BlockSpec((b_blk, OUT_W), lambda i: (i, 0)),
    )

    out = pl.pallas_call(
        _bert_cnn_kernel,
        out_shape=jax.ShapeDtypeStruct((bt, OUT_W), jnp.float32),
        grid_spec=grid_spec,
        compiler_params=pltpu.CompilerParams(
            dimension_semantics=("parallel",),          # v7x: shard batch across 2 TCs
            vmem_limit_bytes=vmem_limit_bytes),
    )(layers, wcat, bconv, wfc_pad, bfc)

    # Wrapper-side un-padding / permute back to the PyTorch filter-major feature order
    # (tiny layout plumbing on a (B, 512) array).
    feat_wm = out[:, :NWIN * NF_PAD].reshape(bt, NWIN, NF_PAD)[:, :, :NF]   # (B, NWIN, NF)
    feat = feat_wm.transpose(0, 2, 1).reshape(bt, FEAT)                     # f*NWIN + wi
    probs = out[:, NWIN * NF_PAD:NWIN * NF_PAD + NUM_CLASSES]
    return probs, feat


def reference(layers, w3, b3, w4, b4, w5, b5, wfc, bfc):
    x = jnp.sum(layers, axis=1)                                # (B, SEQ, EMB)
    pooled = []
    for wk, bk in ((w3, b3), (w4, b4), (w5, b5)):
        w = wk.shape[0]
        l_out = SEQ - w + 1
        acc = jnp.zeros((B, l_out, NF), jnp.float32)
        for j in range(w):
            acc = acc + jnp.einsum('bld,df->blf', x[:, j:j + l_out, :], wk[j])
        acc = jnp.maximum(acc + bk[0][None, None, :], 0.0)
        pooled.append(jnp.max(acc, axis=1))
    feat = jnp.stack(pooled, axis=2).reshape(B, FEAT)          # torch filter-major order
    logits = feat @ wfc + bfc
    return jax.nn.softmax(logits, axis=1), feat


if __name__ == "__main__":
    key = jax.random.PRNGKey(0)
    keys = jax.random.split(key, 10)

    # synthetic "last 4 BERT encoder layers" activations: (B, 4, SEQ, EMB)
    layers = jax.random.normal(keys[0], (B, 4, SEQ, EMB), jnp.float32)

    # Conv1d weights: PyTorch stores (out_ch, in_ch, k); stored here as (k, in_ch, out_ch)
    w3 = 0.1 * jax.random.normal(keys[1], (3, EMB, NF), jnp.float32)
    b3 = 0.1 * jax.random.normal(keys[2], (1, NF), jnp.float32)
    w4 = 0.1 * jax.random.normal(keys[3], (4, EMB, NF), jnp.float32)
    b4 = 0.1 * jax.random.normal(keys[4], (1, NF), jnp.float32)
    w5 = 0.1 * jax.random.normal(keys[5], (5, EMB, NF), jnp.float32)
    b5 = 0.1 * jax.random.normal(keys[6], (1, NF), jnp.float32)
    # fc: PyTorch Linear weight is (num_classes, FEAT); stored here pre-transposed (FEAT, C)
    wfc = 0.1 * jax.random.normal(keys[7], (FEAT, NUM_CLASSES), jnp.float32)
    bfc = 0.1 * jax.random.normal(keys[8], (1, NUM_CLASSES), jnp.float32)

    probs_ref, feat_ref = reference(layers, w3, b3, w4, b4, w5, b5, wfc, bfc)

    # f32 path: conv/bias path is exact; softmax uses the approximate (EUP) reciprocal,
    # so probs get a slightly looser tolerance.
    probs, feat = bert_cnn_forward(layers, w3, b3, w4, b4, w5, b5, wfc, bfc)
    jax.block_until_ready((probs, feat))
    assert probs.shape == (B, NUM_CLASSES) and feat.shape == (B, FEAT)
    assert jnp.allclose(feat, feat_ref, atol=1e-4, rtol=1e-4)
    assert jnp.allclose(probs, probs_ref, atol=2e-3, rtol=2e-3)
    assert jnp.allclose(jnp.sum(probs, axis=-1), 1.0, atol=2e-3)

    # bf16 streamed path (v6e/v7x production config): layers + conv weights in bf16,
    # f32 accumulation / VPU work; validated with loosened tolerance.
    probs_bf, feat_bf = bert_cnn_forward(layers, w3, b3, w4, b4, w5, b5, wfc, bfc,
                                         matmul_dtype=jnp.bfloat16)
    jax.block_until_ready((probs_bf, feat_bf))
    assert jnp.allclose(feat_bf, feat_ref, atol=2e-1, rtol=1e-1)
    assert jnp.allclose(probs_bf, probs_ref, atol=5e-2, rtol=5e-2)

    print("KERNEL_OK")
</pallas_src>

<mosaic_0001>
module attributes {stable_mosaic.version = 11 : i64} {
  func.func @_bert_cnn_kernel(%arg0: i32, %arg1: memref<2x4x16x32xf32, #tpu.memory_space<vmem>>, %arg2: memref<32x1536xf32, #tpu.memory_space<vmem>>, %arg3: memref<3x128xf32, #tpu.memory_space<vmem>>, %arg4: memref<384x3xf32, #tpu.memory_space<vmem>>, %arg5: memref<1x3xf32, #tpu.memory_space<vmem>>, %arg6: memref<2x512xf32, #tpu.memory_space<vmem>>) attributes {dimension_semantics = [#tpu.dimension_semantics<parallel>], iteration_bounds = array<i64: 1>, scalar_prefetch = 0 : i64, scratch_operands = 0 : i64, tpu.core_type = #tpu.core_type<tc>, window_params = [{transform_indices = @transform_0, window_bounds = array<i64: 2, 4, 16, 32>}, {pipeline_mode = #tpu.pipeline_mode<synchronous>, transform_indices = @transform_1, window_bounds = array<i64: 32, 1536>}, {pipeline_mode = #tpu.pipeline_mode<synchronous>, transform_indices = @transform_2, window_bounds = array<i64: 3, 128>}, {pipeline_mode = #tpu.pipeline_mode<synchronous>, transform_indices = @transform_3, window_bounds = array<i64: 384, 3>}, {pipeline_mode = #tpu.pipeline_mode<synchronous>, transform_indices = @transform_4, window_bounds = array<i64: 1, 3>}, {transform_indices = @transform_5, window_bounds = array<i64: 2, 512>}]} {
    %c0 = arith.constant 0 : index
    %c0_0 = arith.constant 0 : index
    %c0_1 = arith.constant 0 : index
    %c0_2 = arith.constant 0 : index
    %0 = vector.load %arg1[%c0, %c0_0, %c0_1, %c0_2] : memref<2x4x16x32xf32, #tpu.memory_space<vmem>>, vector<2x4x16x32xf32>
    %cst = arith.constant dense<0.000000e+00> : vector<2x16x32xf32>
    %1 = vector.multi_reduction <add>, %0, %cst [1] : vector<2x4x16x32xf32> to vector<2x16x32xf32>
    %2 = vector.shape_cast %1 : vector<2x16x32xf32> to vector<32x32xf32>
    %c0_3 = arith.constant 0 : index
    %c0_4 = arith.constant 0 : index
    %3 = vector.load %arg2[%c0_3, %c0_4] : memref<32x1536xf32, #tpu.memory_space<vmem>>, vector<32x1536xf32>
    %cst_5 = arith.constant dense<0.000000e+00> : vector<32x1536xf32>
    %4 = tpu.matmul %2, %3, %cst_5 {dimension_numbers = #tpu.dot_dimension_numbers<[1], [0], [0], [1], [0, 0, 1, 1], [], []>} : vector<32x32xf32>, vector<32x1536xf32>, vector<32x1536xf32> -> vector<32x1536xf32>
    %c0_6 = arith.constant 0 : index
    %c0_7 = arith.constant 0 : index
    %5 = vector.load %arg3[%c0_6, %c0_7] : memref<3x128xf32, #tpu.memory_space<vmem>>, vector<3x128xf32>
    %6 = tpu.iota {dimensions = array<i32: 0>} : vector<32x1xi32>
    %c16_i32 = arith.constant 16 : i32
    %7 = vector.broadcast %c16_i32 : i32 to vector<32x1xi32>
    %8 = arith.remsi %6, %7 : vector<32x1xi32>
    %9 = vector.extract_strided_slice %4 {offsets = [0, 0], sizes = [32, 128], strides = [1, 1]} : vector<32x1536xf32> to vector<32x128xf32>
    %10 = vector.extract_strided_slice %4 {offsets = [0, 128], sizes = [32, 128], strides = [1, 1]} : vector<32x1536xf32> to vector<32x128xf32>
    %c31_i32 = arith.constant 31 : i32
    %11 = tpu.dynamic_rotate %10 by %c31_i32 dim 0 : vector<32x128xf32>, i32 -> vector<32x128xf32>
    %12 = arith.addf %9, %11 : vector<32x128xf32>
    %13 = vector.extract_strided_slice %4 {offsets = [0, 256], sizes = [32, 128], strides = [1, 1]} : vector<32x1536xf32> to vector<32x128xf32>
    %c30_i32 = arith.constant 30 : i32
    %14 = tpu.dynamic_rotate %13 by %c30_i32 dim 0 : vector<32x128xf32>, i32 -> vector<32x128xf32>
    %15 = arith.addf %12, %14 : vector<32x128xf32>
    %16 = vector.extract_strided_slice %5 {offsets = [0, 0], sizes = [1, 128], strides = [1, 1]} : vector<3x128xf32> to vector<1x128xf32>
    %17 = vector.shape_cast %16 : vector<1x128xf32> to vector<128xf32>
    %18 = vector.shape_cast %17 : vector<128xf32> to vector<1x128xf32>
    %19 = vector.broadcast %18 : vector<1x128xf32> to vector<32x128xf32>
    %20 = arith.addf %15, %19 : vector<32x128xf32>
    %cst_8 = arith.constant 0.000000e+00 : f32
    %21 = vector.broadcast %cst_8 : f32 to vector<32x128xf32>
    %22 = arith.maximumf %20, %21 : vector<32x128xf32>
    %c14_i32 = arith.constant 14 : i32
    %23 = vector.broadcast %c14_i32 : i32 to vector<32x1xi32>
    %24 = arith.cmpi slt, %8, %23 : vector<32x1xi32>
    %cst_9 = arith.constant 0.000000e+00 : f32
    %25 = vector.shape_cast %24 : vector<32x1xi1> to vector<32x1xi1>
    %26 = vector.broadcast %25 : vector<32x1xi1> to vector<32x128xi1>
    %27 = vector.broadcast %cst_9 : f32 to vector<32x128xf32>
    %28 = arith.select %26, %22, %27 : vector<32x128xi1>, vector<32x128xf32>
    %29 = vector.shape_cast %28 : vector<32x128xf32> to vector<2x16x128xf32>
    %cst_10 = arith.constant dense<0xFF800000> : vector<2x128xf32>
    %30 = vector.multi_reduction <maximumf>, %29, %cst_10 [1] : vector<2x16x128xf32> to vector<2x128xf32>
    %31 = vector.extract_strided_slice %4 {offsets = [0, 384], sizes = [32, 128], strides = [1, 1]} : vector<32x1536xf32> to vector<32x128xf32>
    %32 = vector.extract_strided_slice %4 {offsets = [0, 512], sizes = [32, 128], strides = [1, 1]} : vector<32x1536xf32> to vector<32x128xf32>
    %c31_i32_11 = arith.constant 31 : i32
    %33 = tpu.dynamic_rotate %32 by %c31_i32_11 dim 0 : vector<32x128xf32>, i32 -> vector<32x128xf32>
    %34 = arith.addf %31, %33 : vector<32x128xf32>
    %35 = vector.extract_strided_slice %4 {offsets = [0, 640], sizes = [32, 128], strides = [1, 1]} : vector<32x1536xf32> to vector<32x128xf32>
    %c30_i32_12 = arith.constant 30 : i32
    %36 = tpu.dynamic_rotate %35 by %c30_i32_12 dim 0 : vector<32x128xf32>, i32 -> vector<32x128xf32>
    %37 = arith.addf %34, %36 : vector<32x128xf32>
    %38 = vector.extract_strided_slice %4 {offsets = [0, 768], sizes = [32, 128], strides = [1, 1]} : vector<32x1536xf32> to vector<32x128xf32>
    %c29_i32 = arith.constant 29 : i32
    %39 = tpu.dynamic_rotate %38 by %c29_i32 dim 0 : vector<32x128xf32>, i32 -> vector<32x128xf32>
    %40 = arith.addf %37, %39 : vector<32x128xf32>
    %41 = vector.extract_strided_slice %5 {offsets = [1, 0], sizes = [1, 128], strides = [1, 1]} : vector<3x128xf32> to vector<1x128xf32>
    %42 = vector.shape_cast %41 : vector<1x128xf32> to vector<128xf32>
    %43 = vector.shape_cast %42 : vector<128xf32> to vector<1x128xf32>
    %44 = vector.broadcast %43 : vector<1x128xf32> to vector<32x128xf32>
    %45 = arith.addf %40, %44 : vector<32x128xf32>
    %cst_13 = arith.constant 0.000000e+00 : f32
    %46 = vector.broadcast %cst_13 : f32 to vector<32x128xf32>
    %47 = arith.maximumf %45, %46 : vector<32x128xf32>
    %c13_i32 = arith.constant 13 : i32
    %48 = vector.broadcast %c13_i32 : i32 to vector<32x1xi32>
    %49 = arith.cmpi slt, %8, %48 : vector<32x1xi32>
    %cst_14 = arith.constant 0.000000e+00 : f32
    %50 = vector.shape_cast %49 : vector<32x1xi1> to vector<32x1xi1>
    %51 = vector.broadcast %50 : vector<32x1xi1> to vector<32x128xi1>
    %52 = vector.broadcast %cst_14 : f32 to vector<32x128xf32>
    %53 = arith.select %51, %47, %52 : vector<32x128xi1>, vector<32x128xf32>
    %54 = vector.shape_cast %53 : vector<32x128xf32> to vector<2x16x128xf32>
    %cst_15 = arith.constant dense<0xFF800000> : vector<2x128xf32>
    %55 = vector.multi_reduction <maximumf>, %54, %cst_15 [1] : vector<2x16x128xf32> to vector<2x128xf32>
    %56 = vector.extract_strided_slice %4 {offsets = [0, 896], sizes = [32, 128], strides = [1, 1]} : vector<32x1536xf32> to vector<32x128xf32>
    %57 = vector.extract_strided_slice %4 {offsets = [0, 1024], sizes = [32, 128], strides = [1, 1]} : vector<32x1536xf32> to vector<32x128xf32>
    %c31_i32_16 = arith.constant 31 : i32
    %58 = tpu.dynamic_rotate %57 by %c31_i32_16 dim 0 : vector<32x128xf32>, i32 -> vector<32x128xf32>
    %59 = arith.addf %56, %58 : vector<32x128xf32>
    %60 = vector.extract_strided_slice %4 {offsets = [0, 1152], sizes = [32, 128], strides = [1, 1]} : vector<32x1536xf32> to vector<32x128xf32>
    %c30_i32_17 = arith.constant 30 : i32
    %61 = tpu.dynamic_rotate %60 by %c30_i32_17 dim 0 : vector<32x128xf32>, i32 -> vector<32x128xf32>
    %62 = arith.addf %59, %61 : vector<32x128xf32>
    %63 = vector.extract_strided_slice %4 {offsets = [0, 1280], sizes = [32, 128], strides = [1, 1]} : vector<32x1536xf32> to vector<32x128xf32>
    %c29_i32_18 = arith.constant 29 : i32
    %64 = tpu.dynamic_rotate %63 by %c29_i32_18 dim 0 : vector<32x128xf32>, i32 -> vector<32x128xf32>
    %65 = arith.addf %62, %64 : vector<32x128xf32>
    %66 = vector.extract_strided_slice %4 {offsets = [0, 1408], sizes = [32, 128], strides = [1, 1]} : vector<32x1536xf32> to vector<32x128xf32>
    %c28_i32 = arith.constant 28 : i32
    %67 = tpu.dynamic_rotate %66 by %c28_i32 dim 0 : vector<32x128xf32>, i32 -> vector<32x128xf32>
    %68 = arith.addf %65, %67 : vector<32x128xf32>
    %69 = vector.extract_strided_slice %5 {offsets = [2, 0], sizes = [1, 128], strides = [1, 1]} : vector<3x128xf32> to vector<1x128xf32>
    %70 = vector.shape_cast %69 : vector<1x128xf32> to vector<128xf32>
    %71 = vector.shape_cast %70 : vector<128xf32> to vector<1x128xf32>
    %72 = vector.broadcast %71 : vector<1x128xf32> to vector<32x128xf32>
    %73 = arith.addf %68, %72 : vector<32x128xf32>
    %cst_19 = arith.constant 0.000000e+00 : f32
    %74 = vector.broadcast %cst_19 : f32 to vector<32x128xf32>
    %75 = arith.maximumf %73, %74 : vector<32x128xf32>
    %c12_i32 = arith.constant 12 : i32
    %76 = vector.broadcast %c12_i32 : i32 to vector<32x1xi32>
    %77 = arith.cmpi slt, %8, %76 : vector<32x1xi32>
    %cst_20 = arith.constant 0.000000e+00 : f32
    %78 = vector.shape_cast %77 : vector<32x1xi1> to vector<32x1xi1>
    %79 = vector.broadcast %78 : vector<32x1xi1> to vector<32x128xi1>
    %80 = vector.broadcast %cst_20 : f32 to vector<32x128xf32>
    %81 = arith.select %79, %75, %80 : vector<32x128xi1>, vector<32x128xf32>
    %82 = vector.shape_cast %81 : vector<32x128xf32> to vector<2x16x128xf32>
    %cst_21 = arith.constant dense<0xFF800000> : vector<2x128xf32>
    %83 = vector.multi_reduction <maximumf>, %82, %cst_21 [1] : vector<2x16x128xf32> to vector<2x128xf32>
    %84 = tpu.concatenate %30, %55, %83 in 1 : vector<2x128xf32>, vector<2x128xf32>, vector<2x128xf32> -> vector<2x384xf32>
    %c0_22 = arith.constant 0 : index
    %c0_23 = arith.constant 0 : index
    %85 = vector.load %arg4[%c0_22, %c0_23] : memref<384x3xf32, #tpu.memory_space<vmem>>, vector<384x3xf32>
    %cst_24 = arith.constant dense<0.000000e+00> : vector<2x3xf32>
    %86 = tpu.matmul %84, %85, %cst_24 {dimension_numbers = #tpu.dot_dimension_numbers<[1], [0], [0], [1], [0, 0, 1, 1], [], []>} : vector<2x384xf32>, vector<384x3xf32>, vector<2x3xf32> -> vector<2x3xf32>
    %c0_25 = arith.constant 0 : index
    %c0_26 = arith.constant 0 : index
    %87 = vector.load %arg5[%c0_25, %c0_26] : memref<1x3xf32, #tpu.memory_space<vmem>>, vector<1x3xf32>
    %88 = vector.broadcast %87 : vector<1x3xf32> to vector<2x3xf32>
    %89 = arith.addf %86, %88 : vector<2x3xf32>
    %cst_27 = arith.constant dense<0xFF800000> : vector<2xf32>
    %90 = vector.multi_reduction <maximumf>, %89, %cst_27 [1] : vector<2x3xf32> to vector<2xf32>
    %91 = vector.shape_cast %90 : vector<2xf32> to vector<2x1xf32>
    %92 = vector.broadcast %91 : vector<2x1xf32> to vector<2x3xf32>
    %93 = arith.subf %89, %92 : vector<2x3xf32>
    %94 = math.exp %93 : vector<2x3xf32>
    %cst_28 = arith.constant dense<0.000000e+00> : vector<2xf32>
    %95 = vector.multi_reduction <add>, %94, %cst_28 [1] : vector<2x3xf32> to vector<2xf32>
    %96 = vector.shape_cast %95 : vector<2xf32> to vector<2x1xf32>
    %97 = tpu.reciprocal %96 {approx = true} : vector<2x1xf32> -> vector<2x1xf32>
    %98 = vector.broadcast %97 : vector<2x1xf32> to vector<2x3xf32>
    %99 = arith.mulf %94, %98 : vector<2x3xf32>
    %cst_29 = arith.constant 0.000000e+00 : f32
    %100 = vector.broadcast %cst_29 : f32 to vector<2x125xf32>
    %101 = tpu.concatenate %84, %99, %100 in 1 : vector<2x384xf32>, vector<2x3xf32>, vector<2x125xf32> -> vector<2x512xf32>
    %c0_30 = arith.constant 0 : index
    %c0_31 = arith.constant 0 : index
    %102 = vector.load %arg6[%c0_30, %c0_31] : memref<2x512xf32, #tpu.memory_space<vmem>>, vector<2x512xf32>
    tpu.vector_store %arg6[%c0_30, %c0_31], %101 {strides = array<i32>} : memref<2x512xf32, #tpu.memory_space<vmem>>, vector<2x512xf32>,
    return
  }
  func.func @transform_0(%arg0: i32) -> (i32, i32, i32, i32) {
    %c0_i32 = arith.constant 0 : i32
    %c0_i32_0 = arith.constant 0 : i32
    %c0_i32_1 = arith.constant 0 : i32
    %c0_i32_2 = arith.constant 0 : i32
    return %arg0, %c0_i32, %c0_i32_0, %c0_i32_1 : i32, i32, i32, i32
  }
  func.func @transform_1(%arg0: i32) -> (i32, i32) {
    %c0_i32 = arith.constant 0 : i32
    %c0_i32_0 = arith.constant 0 : i32
    %c0_i32_1 = arith.constant 0 : i32
    return %c0_i32, %c0_i32_0 : i32, i32
  }
  func.func @transform_2(%arg0: i32) -> (i32, i32) {
    %c0_i32 = arith.constant 0 : i32
    %c0_i32_0 = arith.constant 0 : i32
    %c0_i32_1 = arith.constant 0 : i32
    return %c0_i32, %c0_i32_0 : i32, i32
  }
  func.func @transform_3(%arg0: i32) -> (i32, i32) {
    %c0_i32 = arith.constant 0 : i32
    %c0_i32_0 = arith.constant 0 : i32
    %c0_i32_1 = arith.constant 0 : i32
    return %c0_i32, %c0_i32_0 : i32, i32
  }
  func.func @transform_4(%arg0: i32) -> (i32, i32) {
    %c0_i32 = arith.constant 0 : i32
    %c0_i32_0 = arith.constant 0 : i32
    %c0_i32_1 = arith.constant 0 : i32
    return %c0_i32, %c0_i32_0 : i32, i32
  }
  func.func @transform_5(%arg0: i32) -> (i32, i32) {
    %c0_i32 = arith.constant 0 : i32
    %c0_i32_0 = arith.constant 0 : i32
    return %arg0, %c0_i32 : i32, i32
  }
}

</mosaic_0001>

<bundles_post_ra>
// kernel: tpu_custom_call.1
= control target key start
LH: loop header
LB: loop body
LE: loop exit
PB: predicated region body
PF: predicated region fallthrough
CT: control target
= control target key end

     0   :  { %10 = vsyncpa [#allocation3], 0  ;;  %s2105_s0 = inlined_call_operand.hbm [shape: f32[2,4,16,32], index: 0, kind: input, shape index: {}]   ;;  %s2106_s1 = inlined_call_operand.vmem [shape: f32[32,1536], index: 1, kind: input, shape index: {}]   ;;  %s2107_s2 = inlined_call_operand.vmem [shape: f32[3,128], index: 2, kind: input, shape index: {}]   ;;  %s2108_s3 = inlined_call_operand.vmem [shape: f32[384,3], index: 3, kind: input, shape index: {}]   ;;  %s2109_s4 = inlined_call_operand.vmem [shape: f32[1,3], index: 4, kind: input, shape index: {}]   ;;  %s2110_s5 = inlined_call_operand.hbm [shape: f32[2,512], index: 5, kind: output, shape index: {}]  }
   0x1   :  { %11 = vsyncpa [#allocation4], 0  ;;  %s1479_s18 = smov [#allocation2]   ;;  %s1431_s22 = scalar_lea.hbm %s2105_s0, 2048 }
   0x2   :  { %s17_s19 = sshll.u32 %s1479_s18, 4  ;;  %p1432_p0 = scmp.ne.s32.totalorder %s2105_s0, %s1431_s22  ;;  %s18_s19 = int_to_ptr.vmem [resolvable:$true] %s17_s19 }
   0x3   :  { %p1435_p1 = scmp.lt.u32.totalorder %s1431_s22, %s2105_s0 }
   0x5   :  { %p1437_p2 = pnand %p1435_p1, %p1432_p0 }
   0x7   :  { %1440 = shalt.err (!%p1437_p2)
}
   0x8   :  { %s1441_s27 = scalar_lea.vmem %s18_s19, 2048  ;;  %p1446_p4 = scmp.lt.s32.totalorder %s18_s19, %s18_s19 }
   0x9   :  { %p1442_p3 = scmp.ne.s32.totalorder %s18_s19, %s1441_s27  ;;  %p1447_p5 = scmp.lt.s32.totalorder %s1441_s27, %s1441_s27 }
   0xb   :  { %p1448_p6 = por %p1447_p5, %p1446_p4 }
   0xd   :  { %p1449_p7 = pnand %p1448_p6, %p1442_p3 }
   0xf   :  { %1452 = shalt.err (!%p1449_p7)
}
  0x10   :  { %s1480_s28 = smov 128   ;;  %s1481_s29 = smov 8  }
  0x11   :  { %23 = dma.hbm_to_vmem [thread:$0]  %s2105_s0, 2048, %s18_s19, [#allocation3], %s1480_s28, %s1480_s28, %s1481_s29  }
  0x12   :  { %1475 = dma.done.wait [#allocation3], 2048  }
  0x13   :  { %1476 = vsyncadd [#allocation3], 4294965248  ;;  %v1482_v0 = vmov 0.0   ;;  %v81_v1 = vld [vmem:[%s2106_s1 + $0x8] sm:$0xff]  ;;  %v83_v3 = vld [vmem:[%s2106_s1 + $0x18] sm:$0xff]  ;;  %vm51_vm0 = vcmask 261120  }
  0x14   :  { %204 = vmatprep.mubr.f32.mxu0 %v1482_v0  ;;  %293 = vmatprep.mubr.f32.mxu1 %v1482_v0  ;;  %v93_v2 = vld [vmem:[%s2106_s1 + $0x68] sm:$0xff]  ;;  %v95_v5 = vld [vmem:[%s2106_s1 + $0x78] sm:$0xff]  ;;  %v80_v6 = vld [vmem:[%s2106_s1] sm:$0xff]  ;;  %vm1484_vm1 = vmmov 0   ;;  %vm948_vm10 = vcmask 1041409   ;;  %vm1154_vm13 = vcmask 17408  }
  0x15   :  { %v1315_v4 = vpack.c.bf16 %v93_v2, %v81_v1  ;;  %v92_v7 = vld [vmem:[%s2106_s1 + $0x60] sm:$0xff]  ;;  %v1323_v8 = vpack.c.bf16 %v95_v5, %v83_v3  ;;  %v82_v10 = vld [vmem:[%s2106_s1 + $0x10] sm:$0xff]  ;;  %v105_v12 = vld [vmem:[%s2106_s1 + $0xc8] sm:$0xff]  ;;  %vm1166_vm14 = vcmask 23552  }
  0x16   :  { %v1317_v9 = vpack.c.bf16 %v92_v7, %v80_v6  ;;  %v94_v11 = vld [vmem:[%s2106_s1 + $0x70] sm:$0xff]  ;;  %v117_v14 = vld [vmem:[%s2106_s1 + $0x128] sm:$0xff]  ;;  %v107_v15 = vld [vmem:[%s2106_s1 + $0xd8] sm:$0xff] }
  0x17   :  { %1316 = vmatprep.subr.bf16.mxu0 %v1315_v4  ;;  %v1325_v13 = vpack.c.bf16 %v94_v11, %v82_v10  ;;  %v119_v16 = vld [vmem:[%s2106_s1 + $0x138] sm:$0xff]  ;;  %1324 = vmatprep.subr.bf16.mxu1 %v1323_v8  ;;  %v1319_v17 = vpack.c.bf16 %v117_v14, %v105_v12  ;;  %v104_v19 = vld [vmem:[%s2106_s1 + $0xc0] sm:$0xff]  ;;  %v106_v21 = vld [vmem:[%s2106_s1 + $0xd0] sm:$0xff] }
  0x18   :  { %1318 = vmatpush1.bf16.msra.mxu0 %v1317_v9  ;;  %v1327_v18 = vpack.c.bf16 %v119_v16, %v107_v15  ;;  %v116_v20 = vld [vmem:[%s2106_s1 + $0x120] sm:$0xff]  ;;  %v118_v23 = vld [vmem:[%s2106_s1 + $0x130] sm:$0xff]  ;;  %v85_v31 = vld [vmem:[%s2106_s1 + $0x28] sm:$0xff] }
  0x19   :  { %1326 = vmatpush1.bf16.msra.mxu1 %v1325_v13  ;;  %v1321_v22 = vpack.c.bf16 %v116_v20, %v104_v19  ;;  %v35_v24 = vld [vmem:[#allocation2] sm:$0xff]  ;;  %v37_v25 = vld [vmem:[#allocation2 + $0x10] sm:$0xff]  ;;  %1320 = vmatprep.subr.bf16.mxu0 %v1319_v17  ;;  %v1329_v26 = vpack.c.bf16 %v118_v23, %v106_v21  ;;  %v97_v34 = vld [vmem:[%s2106_s1 + $0x88] sm:$0xff] }
  0x1a   :  { %1328 = vmatprep.subr.bf16.mxu1 %v1327_v18  ;;  %v39_v27 = vld [vmem:[#allocation2 + $0x20] sm:$0xff]  ;;  %v41_v28 = vld [vmem:[#allocation2 + $0x30] sm:$0xff]  ;;  %v52_v29 = vsel %vm51_vm0, %v35_v24, 0.0  ;;  %v53_v30 = vsel %vm51_vm0, %v37_v25, 0.0  ;;  %v1331_v38 = vpack.c.bf16 %v97_v34, %v85_v31  ;;  %v36_v39 = vld [vmem:[#allocation2 + $0x8] sm:$0xff] }
  0x1b   :  { %v54_v32 = vadd.f32 %v53_v30, %v52_v29  ;;  %v55_v33 = vsel %vm51_vm0, %v39_v27, 0.0  ;;  %v84_v35 = vld [vmem:[%s2106_s1 + $0x20] sm:$0xff]  ;;  %v57_v37 = vsel %vm51_vm0, %v41_v28, 0.0  ;;  %v38_v40 = vld [vmem:[#allocation2 + $0x18] sm:$0xff]  ;;  %v40_v41 = vld [vmem:[#allocation2 + $0x28] sm:$0xff]  ;;  %v59_v44 = vsel %vm51_vm0, %v36_v39, 0.0 }
  0x1c   :  { %v96_v36 = vld [vmem:[%s2106_s1 + $0x80] sm:$0xff]  ;;  %1322 = vmatpush1.bf16.msra.mxu0 %v1321_v22  ;;  %v42_v43 = vld [vmem:[#allocation2 + $0x38] sm:$0xff]  ;;  %v60_v45 = vsel %vm51_vm0, %v38_v40, 0.0  ;;  %v62_v46 = vsel %vm51_vm0, %v40_v41, 0.0  ;;  %v86_v52 = vld [vmem:[%s2106_s1 + $0x30] sm:$0xff] }
  0x1d   :  { %1330 = vmatpush1.bf16.msra.mxu1 %v1329_v26  ;;  %v56_v42 = vadd.f32 %v55_v33, %v54_v32  ;;  %v87_v47 = vld [vmem:[%s2106_s1 + $0x38] sm:$0xff]  ;;  %1332 = vmatprep.subr.bf16.mxu0 %v1331_v38  ;;  %v1333_v49 = vpack.c.bf16 %v96_v36, %v84_v35  ;;  %v61_v50 = vadd.f32 %v60_v45, %v59_v44  ;;  %v98_v53 = vld [vmem:[%s2106_s1 + $0x90] sm:$0xff]  ;;  %v43_v54 = vld [vmem:[#allocation2 + $0x40] sm:$0xff]  ;;  %v64_v56 = vsel %vm51_vm0, %v42_v43, 0.0 }
  0x1e   :  { %v99_v48 = vld [vmem:[%s2106_s1 + $0x98] sm:$0xff]  ;;  %v1341_v57 = vpack.c.bf16 %v98_v53, %v86_v52  ;;  %v45_v58 = vld [vmem:[#allocation2 + $0x50] sm:$0xff]  ;;  %v47_v59 = vld [vmem:[#allocation2 + $0x60] sm:$0xff]  ;;  %v66_v61 = vsel %vm51_vm0, %v43_v54, 0.0 }
  0x1f   :  { %v1339_v51 = vpack.c.bf16 %v99_v48, %v87_v47  ;;  %v1610_v55 = vadd.f32 %v57_v37, %v56_v42  ;;  %v49_v60 = vld [vmem:[#allocation2 + $0x70] sm:$0xff]  ;;  %v63_v62 = vadd.f32 %v62_v46, %v61_v50  ;;  %v67_v63 = vsel %vm51_vm0, %v45_v58, 0.0  ;;  %v109_v2 = vld [vmem:[%s2106_s1 + $0xe8] sm:$0xff]  ;;  %v108_v4 = vld [vmem:[%s2106_s1 + $0xe0] sm:$0xff] }
  0x20   :  { %v69_v1 = vsel %vm51_vm0, %v47_v59, 0.0  ;;  %v121_v3 = vld [vmem:[%s2106_s1 + $0x148] sm:$0xff]  ;;  %v68_v5 = vadd.f32 %v67_v63, %v66_v61  ;;  %v120_v7 = vld [vmem:[%s2106_s1 + $0x140] sm:$0xff]  ;;  %v46_v9 = vld [vmem:[#allocation2 + $0x58] sm:$0xff]  ;;  %v71_v11 = vsel %vm51_vm0, %v49_v60, 0.0 }
  0x21   :  { %1340 = vmatprep.subr.bf16.mxu1 %v1339_v51  ;;  %1203 = vmatmul.mubr.msk.f32.vlgmr.msra.gmra.mrb[0].mxu0 %vm51_vm0, %v1610_v55  ;;  %v1335_v6 = vpack.c.bf16 %v121_v3, %v109_v2  ;;  %v44_v8 = vld [vmem:[#allocation2 + $0x48] sm:$0xff]  ;;  %v1633_v10 = vadd.f32 %v64_v56, %v63_v62  ;;  %v50_v13 = vld [vmem:[#allocation2 + $0x78] sm:$0xff]  ;;  %v74_v15 = vsel %vm51_vm0, %v46_v9, 0.0  ;;  %v1337_v18 = vpack.c.bf16 %v120_v7, %v108_v4  ;;  %v110_v22 = vld [vmem:[%s2106_s1 + $0xf0] sm:$0xff] }
  0x22   :  { %1207 = vmatmul.mubr.msk.f32.vlgmr.msra.gmra.mrb[0].mxu1 %vm51_vm0, %v1610_v55  ;;  %1334 = vmatpush1.bf16.msra.mxu0 %v1333_v49  ;;  %v48_v12 = vld [vmem:[#allocation2 + $0x68] sm:$0xff]  ;;  %v73_v14 = vsel %vm51_vm0, %v44_v8, 0.0  ;;  %v111_v16 = vld [vmem:[%s2106_s1 + $0xf8] sm:$0xff]  ;;  %v70_v17 = vadd.f32 %v69_v1, %v68_v5  ;;  %v122_v23 = vld [vmem:[%s2106_s1 + $0x150] sm:$0xff]  ;;  %v78_v33 = vsel %vm51_vm0, %v50_v13, 0.0 }
  0x23   :  { %210 = vmatprep.mubr.f32.mxu0 %v1482_v0  ;;  %299 = vmatprep.mubr.f32.mxu1 %v1482_v0  ;;  %v75_v19 = vadd.f32 %v74_v15, %v73_v14  ;;  %v76_v20 = vsel %vm51_vm0, %v48_v12, 0.0  ;;  %v123_v21 = vld [vmem:[%s2106_s1 + $0x158] sm:$0xff]  ;;  %v1345_v25 = vpack.c.bf16 %v122_v23, %v110_v22  ;;  %v89_v26 = vld [vmem:[%s2106_s1 + $0x48] sm:$0xff]  ;;  %v88_v36 = vld [vmem:[%s2106_s1 + $0x40] sm:$0xff] }
  0x24   :  { %1342 = vmatpush1.bf16.msra.mxu1 %v1341_v57  ;;  %1336 = vmatprep.subr.bf16.mxu0 %v1335_v6  ;;  %v1343_v24 = vpack.c.bf16 %v123_v21, %v111_v16  ;;  %v101_v27 = vld [vmem:[%s2106_s1 + $0xa8] sm:$0xff]  ;;  %v1662_v28 = vadd.f32 %v71_v11, %v70_v17  ;;  %v91_v31 = vld [vmem:[%s2106_s1 + $0x58] sm:$0xff]  ;;  %v100_v37 = vld [vmem:[%s2106_s1 + $0xa0] sm:$0xff] }
  0x25   :  { %1204 = vmatmul.mubr.msk.f32.gmra.mrb[2].mxu0 %vm51_vm0, %v1633_v10  ;;  %v77_v29 = vadd.f32 %v76_v20, %v75_v19  ;;  %v1347_v30 = vpack.c.bf16 %v101_v27, %v89_v26  ;;  %v103_v32 = vld [vmem:[%s2106_s1 + $0xb8] sm:$0xff]  ;;  %v90_v38 = vld [vmem:[%s2106_s1 + $0x50] sm:$0xff]  ;;  %v113_v40 = vld [vmem:[%s2106_s1 + $0x108] sm:$0xff]  ;;  %v1349_v44 = vpack.c.bf16 %v100_v37, %v88_v36 }
  0x26   :  { %1208 = vmatmul.mubr.msk.f32.gmra.mrb[2].mxu1 %vm51_vm0, %v1633_v10  ;;  %216 = vmatprep.mubr.f32.mxu0 %v1482_v0  ;;  %v1355_v34 = vpack.c.bf16 %v103_v32, %v91_v31  ;;  %v102_v39 = vld [vmem:[%s2106_s1 + $0xb0] sm:$0xff]  ;;  %v125_v41 = vld [vmem:[%s2106_s1 + $0x168] sm:$0xff]  ;;  %v115_v42 = vld [vmem:[%s2106_s1 + $0x118] sm:$0xff] }
  0x27   :  { %305 = vmatprep.mubr.f32.mxu1 %v1482_v0  ;;  %1338 = vmatpush1.bf16.msra.mxu0 %v1337_v18  ;;  %v79_v35 = vadd.f32 %v78_v33, %v77_v29  ;;  %v127_v43 = vld [vmem:[%s2106_s1 + $0x178] sm:$0xff]  ;;  %v1357_v45 = vpack.c.bf16 %v102_v39, %v90_v38  ;;  %v112_v46 = vld [vmem:[%s2106_s1 + $0x100] sm:$0xff]  ;;  %v1351_v47 = vpack.c.bf16 %v125_v41, %v113_v40  ;;  %v114_v50 = vld [vmem:[%s2106_s1 + $0x110] sm:$0xff] }
  0x28   :  { %1344 = vmatprep.subr.bf16.mxu1 %v1343_v24  ;;  %1348 = vmatprep.subr.bf16.mxu0 %v1347_v30  ;;  %v124_v48 = vld [vmem:[%s2106_s1 + $0x160] sm:$0xff]  ;;  %v1359_v49 = vpack.c.bf16 %v127_v43, %v115_v42  ;;  %v126_v51 = vld [vmem:[%s2106_s1 + $0x170] sm:$0xff]  ;;  %v960_v58 = vld [vmem:[%s2108_s3 + $0x8] sm:$0xff]  ;;  %v1483_v24 = vmov 0.0|0.0  }
  0x29   :  { %1346 = vmatpush1.bf16.msra.mxu1 %v1345_v25  ;;  %1205 = vmatmul.mubr.msk.f32.gmra.mrb[4].mxu0 %vm51_vm0, %v1662_v28  ;;  %v1353_v52 = vpack.c.bf16 %v124_v48, %v112_v46  ;;  %v1361_v53 = vpack.c.bf16 %v126_v51, %v114_v50  ;;  %v975_v54 = vld [vmem:[%s2108_s3 + $0x80] sm:$0xff]  ;;  %v977_v60 = vld [vmem:[%s2108_s3 + $0x90] sm:$0xff]  ;;  %v978_v61 = vld [vmem:[%s2108_s3 + $0x98] sm:$0xff] }
  0x2a   :  { %1209 = vmatmul.mubr.msk.f32.gmra.mrb[4].mxu1 %vm51_vm0, %v1662_v28  ;;  %222 = vmatprep.mubr.f32.mxu0 %v1482_v0  ;;  %v959_v57 = vld [vmem:[%s2108_s3] sm:$0xff]  ;;  %v1367_v62 = vpack.c.bf16 %v978_v61, %v977_v60  ;;  %v961_v63 = vld [vmem:[%s2108_s3 + $0x10] sm:$0xff]  ;;  %v962_v1 = vld [vmem:[%s2108_s3 + $0x18] sm:$0xff] }
  0x2b   :  { %311 = vmatprep.mubr.f32.mxu1 %v1482_v0  ;;  %1356 = vmatprep.subr.bf16.mxu1 %v1355_v34  ;;  %v1365_v59 = vpack.c.bf16 %v960_v58, %v959_v57  ;;  %v1369_v2 = vpack.c.bf16 %v962_v1, %v961_v63  ;;  %v979_v3 = vld [vmem:[%s2108_s3 + $0xa0] sm:$0xff]  ;;  %v980_v4 = vld [vmem:[%s2108_s3 + $0xa8] sm:$0xff]  ;;  %v981_v9 = vld [vmem:[%s2108_s3 + $0xb0] sm:$0xff]  ;;  %v675_v63 = vlaneseq }
  0x2c   :  { %v1371_v5 = vpack.c.bf16 %v980_v4, %v979_v3  ;;  %v963_v6 = vld [vmem:[%s2108_s3 + $0x20] sm:$0xff]  ;;  %v964_v7 = vld [vmem:[%s2108_s3 + $0x28] sm:$0xff]  ;;  %v965_v12 = vld [vmem:[%s2108_s3 + $0x30] sm:$0xff] }
  0x2d   :  { %1206 = vmatmul.mubr.msk.f32.gmra.mrb[6].mxu0 %vm51_vm0, %v79_v35  ;;  %v1373_v8 = vpack.c.bf16 %v964_v7, %v963_v6  ;;  %v966_v13 = vld [vmem:[%s2108_s3 + $0x38] sm:$0xff]  ;;  %v983_v15 = vld [vmem:[%s2108_s3 + $0xc0] sm:$0xff]  ;;  %v984_v16 = vld [vmem:[%s2108_s3 + $0xc8] sm:$0xff]  ;;  %v1906_v3 = vshrl.u32 %v675_v63, 7 }
  0x2e   :  { %1210 = vmatmul.mubr.msk.f32.gmra.mrb[6].mxu1 %vm51_vm0, %v79_v35  ;;  %382 = vmatprep.mubr.f32.mxu0 %v1482_v0  ;;  %v1377_v14 = vpack.c.bf16 %v966_v13, %v965_v12  ;;  %v1379_v17 = vpack.c.bf16 %v984_v16, %v983_v15  ;;  %v967_v18 = vld [vmem:[%s2108_s3 + $0x40] sm:$0xff]  ;;  %v968_v19 = vld [vmem:[%s2108_s3 + $0x48] sm:$0xff]  ;;  %v985_v25 = vld [vmem:[%s2108_s3 + $0xd0] sm:$0xff] }
  0x2f   :  { %471 = vmatprep.mubr.f32.mxu1 %v1482_v0  ;;  %v1381_v20 = vpack.c.bf16 %v968_v19, %v967_v18  ;;  %v991_v21 = vld [vmem:[%s2108_s3 + $0x100] sm:$0xff]  ;;  %v992_v22 = vld [vmem:[%s2108_s3 + $0x108] sm:$0xff]  ;;  %v986_v26 = vld [vmem:[%s2108_s3 + $0xd8] sm:$0xff]  ;;  %vm725_vm2 = vcmp.lt.s32.totalorder %v1906_v3, 6  ;;  %vm712_vm3 = vcmp.lt.s32.totalorder %v1906_v3, 7  ;;  %v736_v16 = vsub.s32 0, %v1906_v3 }
  0x30   :  { %v1396_v23 = vpack.c.bf16 %v992_v22, %v991_v21  ;;  %v1383_v27 = vpack.c.bf16 %v986_v26, %v985_v25  ;;  %v970_v29 = vld [vmem:[%s2108_s3 + $0x58] sm:$0xff]  ;;  %v993_v31 = vld [vmem:[%s2108_s3 + $0x110] sm:$0xff]  ;;  %v987_v34 = vld [vmem:[%s2108_s3 + $0xe0] sm:$0xff]  ;;  %v677_v25 = vadd.s32 8, %v1906_v3  ;;  %vm804_vm5 = vcmp.lt.s32.totalorder %v1906_v3, 5 }
  0x31   :  { %1211 = vmatmul.mubr.msk.f32.vlgmr.msra.gmra.mrb[8].mxu0 %vm51_vm0, %v1610_v55  ;;  %v994_v32 = vld [vmem:[%s2108_s3 + $0x118] sm:$0xff]  ;;  %v971_v37 = vld [vmem:[%s2108_s3 + $0x60] sm:$0xff]  ;;  %v972_v38 = vld [vmem:[%s2108_s3 + $0x68] sm:$0xff]  ;;  %vm895_vm8 = vcmp.lt.s32.totalorder %v1906_v3, 4 }
  0x32   :  { %1215 = vmatmul.mubr.msk.f32.vlgmr.msra.gmra.mrb[8].mxu1 %vm51_vm0, %v1610_v55  ;;  %1350 = vmatpush1.bf16.msra.mxu0 %v1349_v44  ;;  %v1399_v33 = vpack.c.bf16 %v994_v32, %v993_v31  ;;  %v1389_v39 = vpack.c.bf16 %v972_v38, %v971_v37  ;;  %v995_v40 = vld [vmem:[%s2108_s3 + $0x120] sm:$0xff]  ;;  %v996_v41 = vld [vmem:[%s2108_s3 + $0x128] sm:$0xff]  ;;  %v989_v43 = vld [vmem:[%s2108_s3 + $0xf0] sm:$0xff]  ;;  %v1935_v37 = vand.u32 15, %v677_v25 }
  0x33   :  { %388 = vmatprep.mubr.f32.mxu0 %v1482_v0  ;;  %477 = vmatprep.mubr.f32.mxu1 %v1482_v0  ;;  %v1402_v42 = vpack.c.bf16 %v996_v41, %v995_v40  ;;  %v990_v44 = vld [vmem:[%s2108_s3 + $0xf8] sm:$0xff]  ;;  %v973_v46 = vld [vmem:[%s2108_s3 + $0x70] sm:$0xff]  ;;  %v1003_v58 = vld [vmem:[%s2108_s3 + $0x160] sm:$0xff] }
  0x34   :  { %1358 = vmatpush1.bf16.msra.mxu1 %v1357_v45  ;;  %1352 = vmatprep.subr.bf16.mxu0 %v1351_v47  ;;  %v1391_v45 = vpack.c.bf16 %v990_v44, %v989_v43  ;;  %v974_v47 = vld [vmem:[%s2108_s3 + $0x78] sm:$0xff]  ;;  %v1005_v61 = vld [vmem:[%s2108_s3 + $0x170] sm:$0xff]  ;;  %vm747_vm4 = vcmp.lt.s32.totalorder %v1935_v37, 14  ;;  %vm826_vm7 = vcmp.lt.s32.totalorder %v1935_v37, 13  ;;  %vm917_vm11 = vcmp.lt.s32.totalorder %v1935_v37, 12 }
  0x35   :  { %1360 = vmatprep.subr.bf16.mxu1 %v1359_v49  ;;  %1212 = vmatmul.mubr.msk.f32.gmra.mrb[10].mxu0 %vm51_vm0, %v1633_v10  ;;  %v1393_v48 = vpack.c.bf16 %v974_v47, %v973_v46  ;;  %v997_v49 = vld [vmem:[%s2108_s3 + $0x130] sm:$0xff]  ;;  %v998_v50 = vld [vmem:[%s2108_s3 + $0x138] sm:$0xff] }
  0x36   :  { %1216 = vmatmul.mubr.msk.f32.gmra.mrb[10].mxu1 %vm51_vm0, %v1633_v10  ;;  %394 = vmatprep.mubr.f32.mxu0 %v1482_v0  ;;  %v1405_v51 = vpack.c.bf16 %v998_v50, %v997_v49 }
  0x37   :  { %483 = vmatprep.mubr.f32.mxu1 %v1482_v0  ;;  %1354 = vmatpush1.bf16.msra.mxu0 %v1353_v52  ;;  %v999_v52 = vld [vmem:[%s2108_s3 + $0x140] sm:$0xff] }
  0x38   :  { %1362 = vmatpush1.bf16.msra.mxu1 %v1361_v53  ;;  %v1000_v53 = vld [vmem:[%s2108_s3 + $0x148] sm:$0xff] }
  0x39   :  { %1213 = vmatmul.mubr.msk.f32.gmra.mrb[12].mxu0 %vm51_vm0, %v1662_v28  ;;  %1395 = vmatprep.subr.bf16.mxu1 %v1483_v24 }
  0x3a   :  { %1217 = vmatmul.mubr.msk.f32.gmra.mrb[12].mxu1 %vm51_vm0, %v1662_v28  ;;  %400 = vmatprep.mubr.f32.mxu0 %v1482_v0 }
  0x3b   :  { %489 = vmatprep.mubr.f32.mxu1 %v1482_v0 }
  0x3d   :  { %1214 = vmatmul.mubr.msk.f32.gmra.mrb[14].mxu0 %vm51_vm0, %v79_v35 }
  0x3e   :  { %1218 = vmatmul.mubr.msk.f32.gmra.mrb[14].mxu1 %vm51_vm0, %v79_v35  ;;  %560 = vmatprep.mubr.f32.mxu0 %v1482_v0 }
  0x3f   :  { %649 = vmatprep.mubr.f32.mxu1 %v1482_v0 }
  0x41   :  { %1219 = vmatmul.mubr.msk.f32.vlgmr.msra.gmra.mrb[16].mxu0 %vm51_vm0, %v1610_v55 }
  0x42   :  { %1223 = vmatmul.mubr.msk.f32.vlgmr.msra.gmra.mrb[16].mxu1 %vm51_vm0, %v1610_v55  ;;  %566 = vmatprep.mubr.f32.mxu0 %v1482_v0  ;;  %v976_v55 = vld [vmem:[%s2108_s3 + $0x88] sm:$0xff] }
  0x43   :  { %655 = vmatprep.mubr.f32.mxu1 %v1482_v0  ;;  %v1363_v56 = vpack.c.bf16 %v976_v55, %v975_v54  ;;  %1397 = vmatpush3.bf16.msra.mxu1 %v1396_v23  ;;  %v1001_v54 = vld [vmem:[%s2108_s3 + $0x150] sm:$0xff]  ;;  %v1408_v55 = vpack.c.bf16 %v1000_v53, %v999_v52 }
  0x44   :  { %1398 = vmatprep.subr.bf16.mxu1 %v1483_v24 }
  0x45   :  { %1220 = vmatmul.mubr.msk.f32.gmra.mrb[18].mxu0 %vm51_vm0, %v1633_v10  ;;  %1364 = vmatprep.subr.bf16.mxu0 %v1363_v56  ;;  %v1002_v56 = vld [vmem:[%s2108_s3 + $0x158] sm:$0xff] }
  0x46   :  { %1224 = vmatmul.mubr.msk.f32.gmra.mrb[18].mxu1 %vm51_vm0, %v1633_v10  ;;  %572 = vmatprep.mubr.f32.mxu0 %v1482_v0  ;;  %v982_v10 = vld [vmem:[%s2108_s3 + $0xb8] sm:$0xff]  ;;  %v1411_v57 = vpack.c.bf16 %v1002_v56, %v1001_v54 }
  0x47   :  { %661 = vmatprep.mubr.f32.mxu1 %v1482_v0  ;;  %1366 = vmatpush3.bf16.msra.mxu0 %v1365_v59  ;;  %v1375_v11 = vpack.c.bf16 %v982_v10, %v981_v9  ;;  %v1004_v59 = vld [vmem:[%s2108_s3 + $0x168] sm:$0xff] }
  0x48   :  { %1368 = vmatprep.subr.bf16.mxu0 %v1367_v62  ;;  %1400 = vmatpush3.bf16.msra.mxu1 %v1399_v33  ;;  %v1414_v60 = vpack.c.bf16 %v1004_v59, %v1003_v58 }
  0x49   :  { %1221 = vmatmul.mubr.msk.f32.gmra.mrb[20].mxu0 %vm51_vm0, %v1662_v28  ;;  %1401 = vmatprep.subr.bf16.mxu1 %v1483_v24 }
  0x4a   :  { %1225 = vmatmul.mubr.msk.f32.gmra.mrb[20].mxu1 %vm51_vm0, %v1662_v28  ;;  %578 = vmatprep.mubr.f32.mxu0 %v1482_v0  ;;  %v969_v28 = vld [vmem:[%s2108_s3 + $0x50] sm:$0xff] }
  0x4b   :  { %667 = vmatprep.mubr.f32.mxu1 %v1482_v0  ;;  %1370 = vmatpush3.bf16.msra.mxu0 %v1369_v2  ;;  %v1385_v30 = vpack.c.bf16 %v970_v29, %v969_v28  ;;  %v679_v28 = vadd.s32 24, %v1906_v3 }
  0x4c   :  { %1372 = vmatprep.subr.bf16.mxu0 %v1371_v5  ;;  %1403 = vmatpush3.bf16.msra.mxu1 %v1402_v42 }
  0x4d   :  { %1222 = vmatmul.mubr.msk.f32.gmra.mrb[22].mxu0 %vm51_vm0, %v79_v35  ;;  %1404 = vmatprep.subr.bf16.mxu1 %v1483_v24  ;;  %v1941_v42 = vand.u32 15, %v679_v28 }
  0x4e   :  { %1226 = vmatmul.mubr.msk.f32.gmra.mrb[22].mxu1 %vm51_vm0, %v79_v35  ;;  %v988_v35 = vld [vmem:[%s2108_s3 + $0xe8] sm:$0xff] }
  0x4f   :  { %1374 = vmatpush3.bf16.msra.mxu0 %v1373_v8  ;;  %v1387_v36 = vpack.c.bf16 %v988_v35, %v987_v34  ;;  %1312 = vmatprep.mubr.msk.f32.mxu1 %vm1484_vm1, %v1482_v0  ;;  %v1006_v0 = vld [vmem:[%s2108_s3 + $0x178] sm:$0xff]  ;;  %vm749_vm6 = vcmp.lt.s32.totalorder %v1941_v42, 14  ;;  %vm828_vm9 = vcmp.lt.s32.totalorder %v1941_v42, 13  ;;  %vm919_vm12 = vcmp.lt.s32.totalorder %v1941_v42, 12 }
  0x50   :  { %1376 = vmatprep.subr.bf16.mxu0 %v1375_v11  ;;  %1406 = vmatpush3.bf16.msra.mxu1 %v1405_v51  ;;  %v1417_v62 = vpack.c.bf16 %v1006_v0, %v1005_v61  ;;  %v815_v61 = vsub.s32 1, %v1906_v3 }
  0x51   :  { %1407 = vmatprep.subr.bf16.mxu1 %v1483_v24 }
  0x53   :  { %1378 = vmatpush3.bf16.msra.mxu0 %v1377_v14 }
  0x54   :  { %1380 = vmatprep.subr.bf16.mxu0 %v1379_v17  ;;  %1409 = vmatpush3.bf16.msra.mxu1 %v1408_v55 }
  0x55   :  { %1410 = vmatprep.subr.bf16.mxu1 %v1483_v24 }
  0x57   :  { %1382 = vmatpush3.bf16.msra.mxu0 %v1381_v20  ;;  %v1922_v20 = vld [vmem:[%s2107_s2] sm:$0x7] }
  0x58   :  { %1384 = vmatprep.subr.bf16.mxu0 %v1383_v27  ;;  %1412 = vmatpush3.bf16.msra.mxu1 %v1411_v57  ;;  %v737_v29 = vrot.slane %v1922_v20, %v736_v16 }
  0x59   :  { %1413 = vmatprep.subr.bf16.mxu1 %v1483_v24 }
  0x5b   :  { %1386 = vmatpush3.bf16.msra.mxu0 %v1385_v30 }
  0x5c   :  { %1388 = vmatprep.subr.bf16.mxu0 %v1387_v36  ;;  %1415 = vmatpush3.bf16.msra.mxu1 %v1414_v60 }
  0x5d   :  { %1416 = vmatprep.subr.bf16.mxu1 %v1483_v24 }
  0x5f   :  { %1390 = vmatpush3.bf16.msra.mxu0 %v1389_v39 }
  0x60   :  { %1392 = vmatprep.subr.bf16.mxu0 %v1391_v45  ;;  %1418 = vmatpush3.bf16.msra.mxu1 %v1417_v62 }
  0x63   :  { %1394 = vmatpush3.bf16.msra.mxu0 %v1393_v48 }
  0xf4   :  { %v206_v1 = vpop.f32.mrb[0].mxu0 }
  0xf5   :  { %v295_v2 = vpop.f32.mrb[0].mxu1  ;;  %v208_v4 = vpop.f32.mrb[1].mxu0 }
  0xf6   :  { %v1908_v5 = vpop.f32.mrb[1].mxu1  ;;  %v721_v6 = vrot.slane %v295_v2, 2  ;;  %v708_v12 = vrot.slane %v208_v4, 1 }
  0xf8   :  { %v212_v7 = vpop.f32.mrb[2].mxu0 }
  0xf9   :  { %v301_v8 = vpop.f32.mrb[2].mxu1  ;;  %v214_v9 = vpop.f32.mrb[3].mxu0 }
  0xfa   :  { %v722_v10 = vrot.slane %v301_v8, 2  ;;  %v1912_v11 = vpop.f32.mrb[3].mxu1  ;;  %v709_v13 = vrot.slane %v214_v9, 1 }
  0xfc   :  { %v728_v14 = vsel %vm725_vm2, %v721_v6, %v722_v10  ;;  %v715_v15 = vsel %vm712_vm3, %v708_v12, %v709_v13  ;;  %v218_v17 = vpop.f32.mrb[4].mxu0 }
  0xfd   :  { %v307_v18 = vpop.f32.mrb[4].mxu1  ;;  %v717_v19 = vadd.f32 %v715_v15, %v206_v1  ;;  %v220_v21 = vpop.f32.mrb[5].mxu0 }
  0xfe   :  { %v723_v22 = vrot.slane %v307_v18, 2  ;;  %v1924_v23 = vpop.f32.mrb[5].mxu1  ;;  %v710_v24 = vrot.slane %v220_v21, 1 }
  0xff   :  { %v730_v26 = vadd.f32 %v728_v14, %v717_v19 }
 0x100   :  { %v727_v27 = vsel %vm725_vm2, %v722_v10, %v723_v22  ;;  %v714_v30 = vsel %vm712_vm3, %v709_v13, %v710_v24  ;;  %v224_v31 = vpop.f32.mrb[6].mxu0 }
 0x101   :  { %v313_v32 = vpop.f32.mrb[6].mxu1  ;;  %v718_v33 = vadd.f32 %v714_v30, %v212_v7  ;;  %v226_v35 = vpop.f32.mrb[7].mxu0  ;;  %v738_v43 = vadd.f32 %v737_v29, %v730_v26 }
 0x102   :  { %v724_v34 = vrot.slane %v313_v32, 2  ;;  %v1933_v36 = vpop.f32.mrb[7].mxu1  ;;  %v711_v38 = vrot.slane %v226_v35, 1 }
 0x103   :  { %v731_v39 = vadd.f32 %v727_v27, %v718_v33  ;;  %v742_v56 = vmax.f32 %v738_v43, 0.0 }
 0x104   :  { %v726_v40 = vsel %vm725_vm2, %v723_v22, %v724_v34  ;;  %v729_v41 = vsel %vm725_vm2, %v724_v34, %v721_v6  ;;  %v713_v44 = vsel %vm712_vm3, %v710_v24, %v711_v38  ;;  %v716_v45 = vsel %vm712_vm3, %v711_v38, %v708_v12  ;;  %v1947_v46 = vpop.f32.mrb[8].mxu0 }
 0x105   :  { %v1949_v47 = vpop.f32.mrb[8].mxu1  ;;  %v739_v48 = vadd.f32 %v737_v29, %v731_v39  ;;  %v719_v49 = vadd.f32 %v713_v44, %v218_v17  ;;  %v720_v50 = vadd.f32 %v716_v45, %v224_v31  ;;  %v1951_v51 = vpop.f32.mrb[9].mxu0  ;;  %v776_v57 = vrot.slane %v1947_v46, 1 }
 0x106   :  { %v1953_v52 = vpop.f32.mrb[9].mxu1  ;;  %v800_v58 = vrot.slane %v1949_v47, 3  ;;  %v788_v7 = vrot.slane %v1951_v51, 2  ;;  %v1974_v22 = vrot.slane %v1922_v20, %v815_v61  ;;  %v906_v46 = vsub.s32 2, %v1906_v3 }
 0x107   :  { %v743_v53 = vmax.f32 %v739_v48, 0.0  ;;  %v732_v54 = vadd.f32 %v726_v40, %v719_v49  ;;  %v733_v55 = vadd.f32 %v729_v41, %v720_v50 }
 0x108   :  { %v390_v59 = vpop.f32.mrb[10].mxu0 }
 0x109   :  { %v479_v60 = vpop.f32.mrb[10].mxu1  ;;  %v759_v0 = vsel %vm747_vm4, %v743_v53, 0.0  ;;  %v740_v62 = vadd.f32 %v737_v29, %v732_v54  ;;  %v741_v63 = vadd.f32 %v737_v29, %v733_v55  ;;  %v777_v1 = vrot.slane %v390_v59, 1  ;;  %v392_v2 = vpop.f32.mrb[11].mxu0 }
 0x10a   :  { %v1961_v4 = vpop.f32.mrb[11].mxu1  ;;  %v762_v6 = vmax.f32 %v742_v56, %v759_v0  ;;  %v789_v8 = vrot.slane %v392_v2, 2  ;;  %v801_v9 = vrot.slane %v479_v60, 3 }
 0x10b   :  { %v744_v10 = vmax.f32 %v740_v62, 0.0  ;;  %v745_v12 = vmax.f32 %v741_v63, 0.0  ;;  %v782_v13 = vsel %vm712_vm3, %v776_v57, %v777_v1 }
 0x10c   :  { %v763_v14 = vrot.slane %v762_v6, 4  ;;  %v784_v15 = vadd.f32 %v782_v13, %v1908_v5  ;;  %v794_v16 = vsel %vm725_vm2, %v788_v7, %v789_v8  ;;  %v807_v17 = vsel %vm804_vm5, %v800_v58, %v801_v9  ;;  %v396_v18 = vpop.f32.mrb[12].mxu0 }
 0x10d   :  { %v485_v19 = vpop.f32.mrb[12].mxu1  ;;  %v761_v21 = vsel %vm749_vm6, %v745_v12, 0.0  ;;  %v778_v24 = vrot.slane %v396_v18, 1  ;;  %v398_v25 = vpop.f32.mrb[13].mxu0 }
 0x10e   :  { %v802_v26 = vrot.slane %v485_v19, 3  ;;  %v1976_v27 = vpop.f32.mrb[13].mxu1  ;;  %v769_v5 = vmax.f32 %v744_v10, %v761_v21  ;;  %v796_v28 = vadd.f32 %v794_v16, %v784_v15  ;;  %v790_v29 = vrot.slane %v398_v25, 2 }
 0x10f   :  { %v764_v30 = vmax.f32 %v762_v6, %v763_v14  ;;  %v781_v31 = vsel %vm712_vm3, %v777_v1, %v778_v24 }
 0x110   :  { %v806_v32 = vsel %vm804_vm5, %v801_v9, %v802_v26  ;;  %v809_v33 = vadd.f32 %v807_v17, %v796_v28  ;;  %v785_v34 = vadd.f32 %v781_v31, %v1912_v11  ;;  %v793_v35 = vsel %vm725_vm2, %v789_v8, %v790_v29  ;;  %v402_v38 = vpop.f32.mrb[14].mxu0 }
 0x111   :  { %v491_v39 = vpop.f32.mrb[14].mxu1  ;;  %v765_v40 = vrot.slane %v764_v30, 2  ;;  %v779_v41 = vrot.slane %v402_v38, 1  ;;  %v404_v44 = vpop.f32.mrb[15].mxu0  ;;  %v770_v11 = vrot.slane %v769_v5, 4 }
 0x112   :  { %v803_v43 = vrot.slane %v491_v39, 3  ;;  %v1986_v45 = vpop.f32.mrb[15].mxu1  ;;  %v817_v47 = vadd.f32 %v1974_v22, %v809_v33  ;;  %v797_v48 = vadd.f32 %v793_v35, %v785_v34  ;;  %v791_v49 = vrot.slane %v404_v44, 2 }
 0x113   :  { %v780_v50 = vsel %vm712_vm3, %v778_v24, %v779_v41  ;;  %v783_v51 = vsel %vm712_vm3, %v779_v41, %v776_v57  ;;  %v766_v0 = vmax.f32 %v764_v30, %v765_v40  ;;  %v771_v10 = vmax.f32 %v769_v5, %v770_v11 }
 0x114   :  { %v805_v53 = vsel %vm804_vm5, %v802_v26, %v803_v43  ;;  %v808_v54 = vsel %vm804_vm5, %v803_v43, %v800_v58  ;;  %v810_v55 = vadd.f32 %v806_v32, %v797_v48  ;;  %v786_v56 = vadd.f32 %v780_v50, %v1924_v23  ;;  %v2000_v60 = vpop.f32.mrb[16].mxu0 }
 0x115   :  { %v787_v59 = vadd.f32 %v783_v51, %v1933_v36  ;;  %v2002_v61 = vpop.f32.mrb[16].mxu1  ;;  %v792_v62 = vsel %vm725_vm2, %v790_v29, %v791_v49  ;;  %v795_v57 = vsel %vm725_vm2, %v791_v49, %v788_v7  ;;  %v2008_v63 = vpop.f32.mrb[17].mxu0  ;;  %v2014_v23 = vrot.slane %v1922_v20, %v906_v46 }
 0x116   :  { %v2010_v1 = vpop.f32.mrb[17].mxu1  ;;  %v821_v36 = vmax.f32 %v817_v47, 0.0  ;;  %v818_v58 = vadd.f32 %v1974_v22, %v810_v55  ;;  %v798_v2 = vadd.f32 %v792_v62, %v786_v56  ;;  %v855_v8 = vrot.slane %v2000_v60, 1 }
 0x117   :  { %v799_v6 = vadd.f32 %v795_v57, %v787_v59  ;;  %v867_v9 = vrot.slane %v2008_v63, 2  ;;  %v879_v7 = vrot.slane %v2002_v61, 3  ;;  %v767_v17 = vrot.slane %v766_v0, 1 }
 0x118   :  { %v822_v12 = vmax.f32 %v818_v58, 0.0  ;;  %v811_v13 = vadd.f32 %v805_v53, %v798_v2  ;;  %v568_v15 = vpop.f32.mrb[18].mxu0  ;;  %v891_v20 = vrot.slane %v2010_v1, 4  ;;  %v772_v25 = vrot.slane %v771_v10, 2 }
 0x119   :  { %v812_v14 = vadd.f32 %v808_v54, %v799_v6  ;;  %v657_v16 = vpop.f32.mrb[18].mxu1  ;;  %v856_v18 = vrot.slane %v568_v15, 1  ;;  %v570_v21 = vpop.f32.mrb[19].mxu0  ;;  %v768_v40 = vmax.f32 %v766_v0, %v767_v17 }
 0x11a   :  { %v880_v19 = vrot.slane %v657_v16, 3  ;;  %v659_v24 = vpop.f32.mrb[19].mxu1  ;;  %v838_v26 = vsel %vm826_vm7, %v822_v12, 0.0  ;;  %v819_v5 = vadd.f32 %v1974_v22, %v811_v13  ;;  %v868_v29 = vrot.slane %v570_v21, 2 }
 0x11b   :  { %v820_v28 = vadd.f32 %v1974_v22, %v812_v14  ;;  %v841_v30 = vmax.f32 %v821_v36, %v838_v26  ;;  %v861_v31 = vsel %vm712_vm3, %v855_v8, %v856_v18  ;;  %v892_v33 = vrot.slane %v659_v24, 4 }
 0x11c   :  { %v885_v32 = vsel %vm804_vm5, %v879_v7, %v880_v19  ;;  %v823_v34 = vmax.f32 %v819_v5, 0.0  ;;  %v863_v35 = vadd.f32 %v861_v31, %v1953_v52  ;;  %v873_v22 = vsel %vm725_vm2, %v867_v9, %v868_v29  ;;  %v574_v38 = vpop.f32.mrb[20].mxu0 }
 0x11d   :  { %v663_v39 = vpop.f32.mrb[20].mxu1  ;;  %v898_v41 = vsel %vm895_vm8, %v891_v20, %v892_v33  ;;  %v857_v43 = vrot.slane %v574_v38, 1  ;;  %v576_v46 = vpop.f32.mrb[21].mxu0  ;;  %v773_v48 = vmax.f32 %v771_v10, %v772_v25  ;;  %v824_v52 = vmax.f32 %v820_v28, 0.0 }
 0x11e   :  { %v881_v44 = vrot.slane %v663_v39, 3  ;;  %v665_v47 = vpop.f32.mrb[21].mxu1  ;;  %v875_v49 = vadd.f32 %v873_v22, %v863_v35  ;;  %v869_v11 = vrot.slane %v576_v46, 2  ;;  %v842_v55 = vrot.slane %v841_v30, 4 }
 0x11f   :  { %v893_v50 = vrot.slane %v665_v47, 4  ;;  %v860_v51 = vsel %vm712_vm3, %v856_v18, %v857_v43  ;;  %v774_v54 = vrot.slane %v773_v48, 1  ;;  %v840_v24 = vsel %vm828_vm9, %v824_v52, 0.0 }
 0x120   :  { %v884_v53 = vsel %vm804_vm5, %v880_v19, %v881_v44  ;;  %v887_v56 = vadd.f32 %v885_v32, %v875_v49  ;;  %v864_v59 = vadd.f32 %v860_v51, %v1961_v4  ;;  %v872_v0 = vsel %vm725_vm2, %v868_v29, %v869_v11  ;;  %v580_v57 = vpop.f32.mrb[22].mxu0 }
 0x121   :  { %v897_v62 = vsel %vm895_vm8, %v892_v33, %v893_v50  ;;  %v669_v36 = vpop.f32.mrb[22].mxu1  ;;  %v858_v58 = vrot.slane %v580_v57, 1  ;;  %v582_v6 = vpop.f32.mrb[23].mxu0  ;;  %v775_v12 = vmax.f32 %v773_v48, %v774_v54  ;;  %v843_v13 = vmax.f32 %v841_v30, %v842_v55 }
 0x122   :  { %v882_v2 = vrot.slane %v669_v36, 3  ;;  %v671_v10 = vpop.f32.mrb[23].mxu1  ;;  %v900_v14 = vadd.f32 %v898_v41, %v887_v56  ;;  %v876_v15 = vadd.f32 %v872_v0, %v864_v59  ;;  %v870_v16 = vrot.slane %v582_v6, 2 }
 0x123   :  { %v894_v17 = vrot.slane %v671_v10, 4  ;;  %v859_v4 = vsel %vm712_vm3, %v857_v43, %v858_v58  ;;  %v862_v18 = vsel %vm712_vm3, %v858_v58, %v855_v8  ;;  %v844_v30 = vrot.slane %v843_v13, 2 }
 0x124   :  { %v883_v19 = vsel %vm804_vm5, %v881_v44, %v882_v2  ;;  %v886_v21 = vsel %vm804_vm5, %v882_v2, %v879_v7  ;;  %v888_v25 = vadd.f32 %v884_v53, %v876_v15  ;;  %v865_v26 = vadd.f32 %v859_v4, %v1976_v27 }
 0x125   :  { %v866_v5 = vadd.f32 %v862_v18, %v1986_v45  ;;  %v871_v60 = vsel %vm725_vm2, %v869_v11, %v870_v16  ;;  %v874_v8 = vsel %vm725_vm2, %v870_v16, %v867_v9  ;;  %v896_v61 = vsel %vm895_vm8, %v893_v50, %v894_v17 }
 0x126   :  { %v899_v7 = vsel %vm895_vm8, %v894_v17, %v891_v20  ;;  %v901_v28 = vadd.f32 %v897_v62, %v888_v25  ;;  %v877_v27 = vadd.f32 %v871_v60, %v865_v26  ;;  %v908_v45 = vadd.f32 %v2014_v23, %v900_v14 }
 0x127   :  { %v878_v29 = vadd.f32 %v874_v8, %v866_v5  ;;  %v848_v31 = vmax.f32 %v823_v34, %v840_v24  ;;  %v949_v63 = vsel %vm948_vm10, %v775_v12, %v768_v40  ;;  %v845_v39 = vmax.f32 %v843_v13, %v844_v30 }
 0x128   :  { %v909_v32 = vadd.f32 %v2014_v23, %v901_v28  ;;  %v889_v9 = vadd.f32 %v883_v19, %v877_v27  ;;  %v912_v20 = vmax.f32 %v908_v45, 0.0  ;;  %v1485_v46 = vmov 1983009808   ;;  %v1227_v19 = vld [vmem:[%s2109_s4] ss:$0 sm:$0xff]  ;;  %s1486_s4 = smov [#allocation5]  }
 0x129   :  { %v890_v33 = vadd.f32 %v886_v21, %v878_v29  ;;  %v849_v35 = vrot.slane %v848_v31, 4  ;;  %v1172_v40 = vunpack.c.l.s4 %v1485_v46  ;;  %v846_v11 = vrot.slane %v845_v39, 1  ;;  %s1194_s14 = sshll.u32 %s1486_s4, 4  ;;  %s1195_s14 = int_to_ptr.vmem [resolvable:$true] %s1194_s14 }
 0x12a   :  { %v913_v1 = vmax.f32 %v909_v32, 0.0  ;;  %v902_v22 = vadd.f32 %v896_v61, %v889_v9  ;;  %s1453_s15 = scalar_lea.vmem %s1195_s14, 128  ;;  %p1458_p9 = scmp.lt.s32.totalorder %s1195_s14, %s1195_s14 }
 0x12b   :  { %v903_v38 = vadd.f32 %v899_v7, %v890_v33  ;;  %v850_v41 = vmax.f32 %v848_v31, %v849_v35  ;;  %v1173_v53 = vunpack.c.0.s8 %v1172_v40  ;;  %v847_v0 = vmax.f32 %v845_v39, %v846_v11  ;;  %p1454_p8 = scmp.ne.s32.totalorder %s1195_s14, %s1453_s15  ;;  %p1459_p10 = scmp.lt.s32.totalorder %s1453_s15, %s1453_s15 }
 0x12c   :  { %v929_v43 = vsel %vm917_vm11, %v913_v1, 0.0  ;;  %v910_v44 = vadd.f32 %v2014_v23, %v902_v22 }
 0x12d   :  { %v911_v34 = vadd.f32 %v2014_v23, %v903_v38  ;;  %v932_v47 = vmax.f32 %v912_v20, %v929_v43  ;;  %v851_v48 = vrot.slane %v850_v41, 2  ;;  %v1176_v57 = vsub.s32 %v1173_v53, %v1906_v3  ;;  %p1460_p11 = por %p1459_p10, %p1458_p9 }
 0x12e   :  { %v914_v52 = vmax.f32 %v910_v44, 0.0 }
 0x12f   :  { %v915_v37 = vmax.f32 %v911_v34, 0.0  ;;  %v933_v49 = vrot.slane %v932_v47, 4  ;;  %v852_v50 = vmax.f32 %v850_v41, %v851_v48  ;;  %p1461_p12 = pnand %p1460_p11, %p1454_p8 }
 0x131   :  { %v931_v51 = vsel %vm919_vm12, %v915_v37, 0.0  ;;  %v934_v54 = vmax.f32 %v932_v47, %v933_v49  ;;  %v853_v56 = vrot.slane %v852_v50, 1 }
 0x132   :  { %v939_v55 = vmax.f32 %v914_v52, %v931_v51 }
 0x133   :  { %v854_v62 = vmax.f32 %v852_v50, %v853_v56  ;;  %v935_v23 = vrot.slane %v934_v54, 2 }
 0x134   :  { %v940_v59 = vrot.slane %v939_v55, 4 }
 0x135   :  { %v953_v42 = vsel %vm948_vm10, %v854_v62, %v847_v0  ;;  %v936_v58 = vmax.f32 %v934_v54, %v935_v23 }
 0x136   :  { %v941_v36 = vmax.f32 %v939_v55, %v940_v59  ;;  %1078 = vmatprep.mubr.f32.mxu0 %v953_v42  ;;  %v1169_v2 = vcombine.low %v949_v63, %v953_v42 }
 0x137   :  { %1079 = vmatmul.mubr.f32.vlgmr.msra.gmra.mrb[24].mxu0 %v949_v63  ;;  %v937_v12 = vrot.slane %v936_v58, 1 }
 0x138   :  { %v942_v6 = vrot.slane %v941_v36, 2  ;;  %v1177_v10 = vrot.slane %v1169_v2, %v1176_v57 }
 0x139   :  { %v938_v15 = vmax.f32 %v936_v58, %v937_v12 }
 0x13a   :  { %v943_v13 = vmax.f32 %v941_v36, %v942_v6 }
 0x13c   :  { %v944_v14 = vrot.slane %v943_v13, 1 }
 0x13e   :  { %v945_v16 = vmax.f32 %v943_v13, %v944_v14 }
 0x140   :  { %v957_v17 = vsel %vm948_vm10, %v945_v16, %v938_v15 }
 0x141   :  { %1313 = vmatmul.mubr.f32.vlgmr.msra.gmra.mrb[24].mxu1 %v957_v17 }
 0x20a   :  { %v1260_v4 = vpop.f32.mrb[24].mxu0 }
 0x20b   :  { %v1261_v18 = vpop.f32.mrb[25].mxu0 }
 0x20c   :  { %v1262_v3 = vadd.f32 %v1261_v18, %v1260_v4 }
 0x20e   :  { %v1081_v21 = vadd.f32 %v1262_v3, %v1227_v19 }
 0x214   :  { %v1150_v24 = vpop.f32.mrb[24].mxu1 }
 0x215   :  { %v1151_v25 = vadd.f32 %v1150_v24, %v1081_v21  ;;  %v1314_v26 = vpop.f32.mrb[25].mxu1 }
 0x217   :  { %v1155_v5 = vsel %vm1154_vm13, %v1151_v25, -inf }
 0x218   :  { %1156 = vmax.xlane.f32.xlu0 %v1155_v5 }
 0x2a5   :  { %v1157_v60 = vpop.xlane.xlu0 %1156 }
 0x2a6   :  { %v1158_v8 = vsub.f32 %v1151_v25, %v1157_v60 }
 0x2a8   :  { %v1159_v61 = vmul.f32 1.442695, %v1158_v8 }
 0x2aa   :  { %1427 = vpow2.f32 %v1159_v61 }
 0x2b4   :  { %v1428_v7 = vpop.eup %1427 }
 0x2b5   :  { %v1161_v28 = vsel %vm1154_vm13, %v1428_v7, 0.0 }
 0x2b6   :  { %1162 = vadd.xlane.f32.xlu0 %v1161_v28 }
 0x343   :  { %v1163_v27 = vpop.xlane.xlu0 %1162 }
 0x344   :  { %1429 = vrcp.f32 %v1163_v27 }
 0x34e   :  { %v1430_v29 = vpop.eup %1429 }
 0x34f   :  { %v1165_v45 = vmul.f32 %v1430_v29, %v1428_v7 }
 0x351   :  { %v1167_v30 = vsel %vm1166_vm14, %v1165_v45, 0.0 }
 0x352   :  { %v1170_v31 = vcombine.low %v957_v17, %v1167_v30 }
 0x354   :  { %v1184_v63 = vrot.slane %v1170_v31, %v1176_v57 }
 0x356   :  { %v1185_v32 = vcombine.low %v1177_v10, %v1184_v63 }
 0x358   :  { %1187 = vst [vmem:[#allocation5] sm:$0xff] %v1185_v32 }
 0x359   :  { %1464 = shalt.err (!%p1461_p12)
}
 0x35a   :  { %s1465_s18 = scalar_lea.hbm %s2110_s5, 128 }
 0x35b   :  { %p1466_p13 = scmp.ne.s32.totalorder %s2110_s5, %s1465_s18  ;;  %p1469_p0 = scmp.lt.u32.totalorder %s1465_s18, %s2110_s5 }
 0x35d   :  { %p1471_p1 = pnand %p1469_p0, %p1466_p13 }
 0x35f   :  { %1474 = shalt.err (!%p1471_p1)
}
 0x360   :  { %1197 = dma.vmem_to_hbm [thread:$0]  %s1195_s14, 128, %s2110_s5, [#allocation4]  }
 0x361   :  { %1477 = dma.done.wait [#allocation4], 128  }
 0x362   :  { %1478 = vsyncadd [#allocation4], 4294967168 }
 0x363   :  { %1201 = vsyncpa [#allocation3], 1 }
 0x364   :  { %1202 = vsyncpa [#allocation4], 1 }

</bundles_post_ra>
